<compile_context>
chip_gen: v7x
topology: tpu7x:2x2x1
jax: 0.10.0
libtpu: 0.0.40
codegen_flags: <defaults>
</compile_context>

<pallas_src>
import numpy as np
import jax
import jax.numpy as jnp
from jax.experimental import pallas as pl
from jax.experimental.pallas import tpu as pltpu

_TWO_PI = np.float32(2.0 * np.pi)


def gfp_kernel(x_ref, w_ref, o_ref):
    # x_ref: (TB, 1) f32, w_ref: (1, half) f32, o_ref: (TB, 2*half)
    half = w_ref.shape[1]
    # Match the PyTorch grouping exactly: (x * W) * 2pi.  VPU broadcast
    # multiply (TB, 1) * (1, half) -> (TB, half).
    x_proj = (x_ref[...] * w_ref[...]) * _TWO_PI
    # Lane-dense 2-D output block: sin -> first half lanes, cos -> second half.
    o_ref[:, :half] = jnp.sin(x_proj).astype(o_ref.dtype)
    o_ref[:, half:] = jnp.cos(x_proj).astype(o_ref.dtype)


def _round_up(x, m):
    return ((x + m - 1) // m) * m


def gfp_forward(x, W, *, block_b=None, out_dtype=jnp.float32):
    """x: (B,) float array of times, W: (embed_dim//2,) fixed projection.

    Returns (B, embed_dim) = [sin(x*W*2pi), cos(x*W*2pi)] along the last dim.
    """
    B = x.shape[0]
    half = W.shape[0]
    width = 2 * half
    out_dtype = jnp.dtype(out_dtype)

    x2 = x.reshape(B, 1).astype(jnp.float32)
    w2 = W.reshape(1, half).astype(jnp.float32)

    # Sublane granularity of a block: 8 rows for 32-bit output, 16 for 16-bit.
    row_quantum = 16 if out_dtype.itemsize == 2 else 8

    # Target ~2 MiB of output per block so per-step overhead is amortized and
    # the writeback DMA streams (tiny blocks are pure pipeline overhead).
    if block_b is None:
        block_b = max(512, (2 << 20) // (width * out_dtype.itemsize))

    if B <= row_quantum:
        # Block dim equals the full array dim -> no divisibility requirement.
        tb = B
    else:
        # Cap at ceil(B/2) (rounded to a sublane multiple) so large batches
        # always yield >= 2 grid steps -> both v7x TensorCores get work.
        tb = min(_round_up(block_b, row_quantum),
                 _round_up(pl.cdiv(B, 2), row_quantum))
        tb = max(row_quantum, min(tb, _round_up(B, row_quantum)))

    grid = (pl.cdiv(B, tb),)

    out = pl.pallas_call(
        gfp_kernel,
        out_shape=jax.ShapeDtypeStruct((B, width), out_dtype),
        grid=grid,
        in_specs=[
            # x tiled over the batch axis.
            pl.BlockSpec((tb, 1), lambda i: (i, 0)),
            # W: constant block index -> stays VMEM-resident across the grid.
            pl.BlockSpec((1, half), lambda i: (0, 0)),
        ],
        out_specs=pl.BlockSpec((tb, width), lambda i: (i, 0)),
        compiler_params=pltpu.CompilerParams(
            dimension_semantics=("parallel",),
        ),
    )(x2, w2)
    return out


if __name__ == "__main__":
    embed_dim = 32
    scale = 30.0
    batch = 8

    key = jax.random.PRNGKey(0)
    k_w, k_x = jax.random.split(key)

    # Deterministic init matching nn.Parameter(torch.randn(half) * scale).
    W = jax.random.normal(k_w, (embed_dim // 2,), dtype=jnp.float32) * scale
    # Example input: a batch of "times".
    x = jax.random.uniform(k_x, (batch,), dtype=jnp.float32)

    out = gfp_forward(x, W)
    out = jax.block_until_ready(out)

    # Pure-JAX reference with the same multiply grouping as the kernel.
    x_proj = (x[:, None] * W[None, :]) * _TWO_PI
    ref = jnp.concatenate([jnp.sin(x_proj), jnp.cos(x_proj)], axis=-1)

    assert out.shape == (batch, embed_dim), out.shape
    # With scale=30 the sin/cos arguments reach O(1e2); f32 range reduction in
    # the kernel vs. XLA can differ by a few ulps of the argument (~2e-5 abs),
    # so the tolerance only needs to cover transcendental-impl differences.
    np.testing.assert_allclose(np.asarray(out), np.asarray(ref),
                               rtol=1e-4, atol=1e-4)
    print("KERNEL_OK")
</pallas_src>

<mosaic_0001>
module attributes {stable_mosaic.version = 11 : i64} {
  func.func @gfp_kernel(%arg0: i32, %arg1: memref<8x1xf32, #tpu.memory_space<vmem>>, %arg2: memref<1x16xf32, #tpu.memory_space<vmem>>, %arg3: memref<8x32xf32, #tpu.memory_space<vmem>>) attributes {dimension_semantics = [#tpu.dimension_semantics<parallel>], iteration_bounds = array<i64: 1>, scalar_prefetch = 0 : i64, scratch_operands = 0 : i64, tpu.core_type = #tpu.core_type<tc>, window_params = [{transform_indices = @transform_0, window_bounds = array<i64: 8, 1>}, {pipeline_mode = #tpu.pipeline_mode<synchronous>, transform_indices = @transform_1, window_bounds = array<i64: 1, 16>}, {transform_indices = @transform_2, window_bounds = array<i64: 8, 32>}]} {
    %c0 = arith.constant 0 : index
    %c0_0 = arith.constant 0 : index
    %0 = vector.load %arg1[%c0, %c0_0] : memref<8x1xf32, #tpu.memory_space<vmem>>, vector<8x1xf32>
    %c0_1 = arith.constant 0 : index
    %c0_2 = arith.constant 0 : index
    %1 = vector.load %arg2[%c0_1, %c0_2] : memref<1x16xf32, #tpu.memory_space<vmem>>, vector<1x16xf32>
    %2 = vector.broadcast %0 : vector<8x1xf32> to vector<8x16xf32>
    %3 = vector.broadcast %1 : vector<1x16xf32> to vector<8x16xf32>
    %4 = arith.mulf %2, %3 : vector<8x16xf32>
    %cst = arith.constant 6.28318548 : f32
    %5 = vector.broadcast %cst : f32 to vector<8x16xf32>
    %6 = arith.mulf %4, %5 : vector<8x16xf32>
    %7 = math.sin %6 : vector<8x16xf32>
    %c0_3 = arith.constant 0 : index
    %c0_4 = arith.constant 0 : index
    %8 = vector.load %arg3[%c0_3, %c0_4] : memref<8x32xf32, #tpu.memory_space<vmem>>, vector<8x16xf32>
    tpu.vector_store %arg3[%c0_3, %c0_4], %7 {strides = array<i32>} : memref<8x32xf32, #tpu.memory_space<vmem>>, vector<8x16xf32>,
    %9 = math.cos %6 : vector<8x16xf32>
    %c0_5 = arith.constant 0 : index
    %c16 = arith.constant 16 : index
    %10 = vector.load %arg3[%c0_5, %c16] : memref<8x32xf32, #tpu.memory_space<vmem>>, vector<8x16xf32>
    tpu.vector_store %arg3[%c0_5, %c16], %9 {strides = array<i32>} : memref<8x32xf32, #tpu.memory_space<vmem>>, vector<8x16xf32>,
    return
  }
  func.func @transform_0(%arg0: i32) -> (i32, i32) {
    %c0_i32 = arith.constant 0 : i32
    %c0_i32_0 = arith.constant 0 : i32
    return %arg0, %c0_i32 : i32, i32
  }
  func.func @transform_1(%arg0: i32) -> (i32, i32) {
    %c0_i32 = arith.constant 0 : i32
    %c0_i32_0 = arith.constant 0 : i32
    %c0_i32_1 = arith.constant 0 : i32
    return %c0_i32, %c0_i32_0 : i32, i32
  }
  func.func @transform_2(%arg0: i32) -> (i32, i32) {
    %c0_i32 = arith.constant 0 : i32
    %c0_i32_0 = arith.constant 0 : i32
    return %arg0, %c0_i32 : i32, i32
  }
}

</mosaic_0001>

<bundles_post_ra>
// kernel: tpu_custom_call.1
= control target key start
LH: loop header
LB: loop body
LE: loop exit
PB: predicated region body
PF: predicated region fallthrough
CT: control target
= control target key end

     0   :  { %v307_v1 = vmov 0   ;;  %s371_s0 = inlined_call_operand.vmem [shape: f32[8,1], index: 0, kind: input, shape index: {}]   ;;  %s372_s1 = inlined_call_operand.vmem [shape: f32[1,16], index: 1, kind: input, shape index: {}]   ;;  %s373_s2 = inlined_call_operand.hbm [shape: f32[8,32], index: 2, kind: output, shape index: {}]  }
   0x1   :  { %v12_v0 = vld [vmem:[%s371_s0] sm:$0xff]  ;;  %278 = vset.pattern.permute.xlu0 %v307_v1 }
   0x2   :  { %7 = vsyncpa [#allocation3], 0  ;;  %16 = vperm.xlu0 %278, %v12_v0   ;;  %v256_v2 = vld [vmem:[%s372_s1] ss:$0 sm:$0xff]  ;;  %v308_v17 = vmov 2102212464  }
   0x3   :  { %v309_v19 = vmov 920167782   ;;  %v310_v23 = vmov 1326507024   ;;  %v311_v25 = vmov 683565275  }
   0x4   :  { %v312_v27 = vmov 2475754826   ;;  %v313_v30 = vmov 2131351028   ;;  %vm131_vm11 = vcmask 130048   ;;  %s314_s0 = smov 16  }
   0x5   :  { %s315_s1 = smov [#allocation2]  }
   0x6   :  { %s248_s13 = sshll.u32 %s315_s1, 4  ;;  %s249_s13 = int_to_ptr.vmem [resolvable:$true] %s248_s13 }
   0x7   :  { %s283_s14 = scalar_lea.vmem %s249_s13, 128  ;;  %p288_p1 = scmp.lt.s32.totalorder %s249_s13, %s249_s13 }
   0x8   :  { %p284_p0 = scmp.ne.s32.totalorder %s249_s13, %s283_s14  ;;  %p289_p2 = scmp.lt.s32.totalorder %s283_s14, %s283_s14 }
   0xa   :  { %p290_p3 = por %p289_p2, %p288_p1 }
   0xc   :  { %p291_p4 = pnand %p290_p3, %p284_p0 }
  0x81   :  { %v17_v3 = vpop.permute.xlu0 %16 }
  0x82   :  { %v25_v4 = vmul.f32 %v256_v2, %v17_v3 }
  0x84   :  { %v337_v5 = vmul.f32 6.2831855, %v25_v4 }
  0x86   :  { %v30_v6 = vand.u32 2139095040, %v337_v5  ;;  %v27_v7 = vand.u32 2147483647, %v337_v5  ;;  %vm29_vm7 = vcmp.lt.s32.totalorder %v337_v5, 0 }
  0x88   :  { %v31_v8 = vshrl.u32 %v30_v6, 23  ;;  %v34_v10 = vand.u32 8388607, %v27_v7  ;;  %vm28_vm8 = vcmp.le.f32.partialorder %v27_v7, 0.7853982 }
  0x8a   :  { %v257_v9 = vadd.s32 4294967169, %v31_v8  ;;  %v35_v13 = vor.u32 8388608, %v34_v10 }
  0x8c   :  { %v37_v11 = vadd.s32 1, %v257_v9  ;;  %v75_v21 = vshll.u32 %v35_v13, 8 }
  0x8e   :  { %vm38_vm0 = vcmp.gt.s32.totalorder %v37_v11, 0 }
  0x8f   :  { %v39_v12 = vsel %vm38_vm0, %v37_v11, 0  ;;  %vm119_vm0 = vweird.f32 %v337_v5 }
  0x90   :  { %v41_v14 = vand.u32 31, %v39_v12  ;;  %v40_v15 = vshrl.u32 %v39_v12, 5 }
  0x92   :  { %v42_v16 = vsub.s32 32, %v41_v14  ;;  %v53_v18 = vshll.u32 %v308_v17, %v41_v14  ;;  %v56_v20 = vshll.u32 %v309_v19, %v41_v14  ;;  %v44_v26 = vshll.u32 %v311_v25, %v41_v14 }
  0x93   :  { %v47_v29 = vshll.u32 %v312_v27, %v41_v14  ;;  %v50_v32 = vshll.u32 %v313_v30, %v41_v14  ;;  %vm62_vm1 = vcmp.lt.s32.totalorder %v40_v15, 4  ;;  %vm59_vm2 = vcmp.lt.s32.totalorder %v40_v15, 1 }
  0x94   :  { %v54_v22 = vshrl.u32 %v309_v19, %v42_v16  ;;  %v57_v24 = vshrl.u32 %v310_v23, %v42_v16  ;;  %v45_v28 = vshrl.u32 %v312_v27, %v42_v16  ;;  %v48_v31 = vshrl.u32 %v313_v30, %v42_v16 }
  0x95   :  { %v51_v33 = vshrl.u32 %v308_v17, %v42_v16  ;;  %v43_v37 = vshrl.u32 %v311_v25, %v42_v16  ;;  %vm60_vm3 = vcmp.lt.s32.totalorder %v40_v15, 2  ;;  %vm61_vm4 = vcmp.lt.s32.totalorder %v40_v15, 3 }
  0x96   :  { %v55_v34 = vor.u32 %v54_v22, %v53_v18  ;;  %v58_v35 = vor.u32 %v57_v24, %v56_v20  ;;  %v46_v36 = vor.u32 %v45_v28, %v44_v26  ;;  %v49_v38 = vor.u32 %v48_v31, %v47_v29 }
  0x97   :  { %v52_v39 = vor.u32 %v51_v33, %v50_v32 }
  0x98   :  { %v68_v40 = vsel %vm62_vm1, %v55_v34, 920167782  ;;  %v72_v41 = vsel %vm62_vm1, %v58_v35, 1326507024  ;;  %v67_v43 = vsel %vm59_vm2, %v46_v36, %v49_v38  ;;  %v63_v46 = vsel %vm59_vm2, %v43_v37, %v46_v36 }
  0x99   :  { %v64_v42 = vsel %vm62_vm1, %v52_v39, 2102212464  ;;  %v69_v44 = vsel %vm61_vm4, %v52_v39, %v68_v40  ;;  %v71_v45 = vsel %vm59_vm2, %v49_v38, %v52_v39  ;;  %v73_v49 = vsel %vm61_vm4, %v55_v34, %v72_v41 }
  0x9a   :  { %v65_v47 = vsel %vm61_vm4, %v49_v38, %v64_v42  ;;  %v70_v48 = vsel %vm60_vm3, %v67_v43, %v69_v44  ;;  %v74_v50 = vsel %vm60_vm3, %v71_v45, %v73_v49  ;;  %vm240_vm1 = vcmask 261248  }
  0x9b   :  { %v343_v51 = vmul.u32.u64.low %v75_v21, %v70_v48  ;;  %v344_v52 = vmul.u32.u64.high %v75_v21, %v70_v48, %v343_v51  ;;  %v346_v53 = vmul.u32.u64.low %v75_v21, %v74_v50  ;;  %v347_v54 = vmul.u32.u64.high %v75_v21, %v74_v50, %v346_v53 }
  0x9c   :  { %v66_v55 = vsel %vm60_vm3, %v63_v46, %v65_v47 }
  0x9d   :  { %v85_v56 = vadd.s32 1, %v344_v52  ;;  %v82_v57 = vmul.u32 %v75_v21, %v66_v55  ;;  %vm84_vm5 = vc.u32 %v347_v54, %v343_v51  ;;  %v83_v6 = vadd.s32 %v343_v51, %v347_v54 }
  0x9f   :  { %v86_v58 = vsel %vm84_vm5, %v85_v56, %v344_v52 }
  0xa0   :  { %v87_v59 = vadd.s32 %v86_v58, %v82_v57 }
  0xa2   :  { %v88_v60 = vadd.s32 536870912, %v87_v59 }
  0xa4   :  { %v89_v61 = vshrl.u32 %v88_v60, 30 }
  0xa6   :  { %v90_v62 = vshll.u32 %v89_v61, 30  ;;  %v113_v19 = vsub.s32 4, %v89_v61 }
  0xa8   :  { %v91_v63 = vsub.s32 %v87_v59, %v90_v62  ;;  %v114_v22 = vsel %vm29_vm7, %v113_v19, %v89_v61 }
  0xa9   :  { %v116_v24 = vsel %vm28_vm8, 0, %v114_v22 }
  0xaa   :  { %v93_v0 = vsub.s32 0, %v91_v63  ;;  %v120_v25 = vadd.s32 3, %v116_v24  ;;  %v226_v27 = vand.u32 3, %v116_v24 }
  0xac   :  { %v258_v1 = vmin.u32 %v93_v0, %v91_v63  ;;  %v121_v26 = vand.u32 3, %v120_v25  ;;  %vm231_vm10 = vcmp.eq.s32.totalorder %v226_v27, 2  ;;  %vm228_vm13 = vcmp.eq.s32.totalorder %v226_v27, 0 }
  0xad   :  { %vm227_vm15 = vcmp.lt.s32.totalorder %v226_v27, 2 }
  0xae   :  { %v95_v2 = vclz %v258_v1  ;;  %vm126_vm9 = vcmp.eq.s32.totalorder %v121_v26, 2  ;;  %vm123_vm12 = vcmp.eq.s32.totalorder %v121_v26, 0  ;;  %vm122_vm14 = vcmp.lt.s32.totalorder %v121_v26, 2 }
  0xb0   :  { %v259_v3 = vadd.s32 4294967294, %v95_v2 }
  0xb2   :  { %vm260_vm6 = vcmp.lt.s32.totalorder %v259_v3, 0 }
  0xb3   :  { %v98_v4 = vsel %vm260_vm6, 0, %v259_v3 }
  0xb4   :  { %v99_v8 = vsub.s32 32, %v98_v4  ;;  %v103_v9 = vsub.s32 4294967266, %v98_v4  ;;  %v100_v10 = vshll.u32 %v91_v63, %v98_v4 }
  0xb6   :  { %v101_v11 = vshrl.u32 %v83_v6, %v99_v8  ;;  %v104_v12 = vadd.s32 127, %v103_v9 }
  0xb8   :  { %v102_v13 = vor.u32 %v101_v11, %v100_v10  ;;  %v105_v14 = vshll.u32 %v104_v12, 23 }
  0xba   :  { %v106_v15 = vor.u32 4788187, %v105_v14  ;;  %v109_v17 = vcvt.s32.f32 %v102_v13 }
  0xbc   :  { %v107_v16 = vand.u32 2147483647, %v106_v15 }
  0xbe   :  { %v110_v18 = vmul.f32 %v109_v17, %v107_v16 }
  0xc0   :  { %v111_v20 = vxor.u32 2147483648, %v110_v18 }
  0xc2   :  { %v112_v21 = vsel %vm29_vm7, %v111_v20, %v110_v18 }
  0xc3   :  { %v115_v23 = vsel %vm28_vm8, %v337_v5, %v112_v21 }
  0xc4   :  { %279 = vcosq.f32 %v115_v23 }
  0xc5   :  { %281 = vsinq.f32 %v115_v23 }
  0xce   :  { %v280_v28 = vpop.eup %279 }
  0xcf   :  { %v282_v29 = vpop.eup %281  ;;  %v127_v30 = vxor.u32 2147483648, %v280_v28 }
  0xd0   :  { %v124_v31 = vxor.u32 2147483648, %v282_v29 }
  0xd1   :  { %v233_v7 = vsel %vm231_vm10, %v127_v30, %v282_v29  ;;  %v128_v32 = vsel %vm126_vm9, %v127_v30, %v282_v29 }
  0xd2   :  { %v230_v33 = vsel %vm228_vm13, %v280_v28, %v124_v31  ;;  %v125_v34 = vsel %vm123_vm12, %v280_v28, %v124_v31 }
  0xd3   :  { %v234_v35 = vsel %vm227_vm15, %v230_v33, %v233_v7  ;;  %v129_v36 = vsel %vm122_vm14, %v125_v34, %v128_v32 }
  0xd4   :  { %v235_v37 = vsel %vm119_vm0, nan, %v234_v35  ;;  %v130_v38 = vsel %vm119_vm0, nan, %v129_v36 }
  0xd5   :  { %237 = vrot.lane.b32.xlu0 %v235_v37, %s314_s0  ;;  %132 = vst.msk [vmem:[#allocation2] sm:$0xff] %vm131_vm11, %v130_v38 }
 0x147   :  { %v238_v39 = vpop.permute.xlu0 %237 }
 0x148   :  { %241 = vst.msk [vmem:[#allocation2] sm:$0xff] %vm240_vm1, %v238_v39 }
 0x149   :  { %294 = shalt.err (!%p291_p4)
}
 0x14a   :  { %s295_s17 = scalar_lea.hbm %s373_s2, 128 }
 0x14b   :  { %p296_p5 = scmp.ne.s32.totalorder %s373_s2, %s295_s17  ;;  %p299_p6 = scmp.lt.u32.totalorder %s295_s17, %s373_s2 }
 0x14d   :  { %p301_p7 = pnand %p299_p6, %p296_p5 }
 0x14f   :  { %304 = shalt.err (!%p301_p7)
}
 0x150   :  { %251 = dma.vmem_to_hbm [thread:$0]  %s249_s13, 128, %s373_s2, [#allocation3]  }
 0x151   :  { %305 = dma.done.wait [#allocation3], 128  }
 0x152   :  { %306 = vsyncadd [#allocation3], 4294967168 }
 0x153   :  { %255 = vsyncpa [#allocation3], 1 }

</bundles_post_ra>
